<compile_context>
chip_gen: v5e
topology: v5e:2x2
jax: 0.10.0
libtpu: 0.0.40
codegen_flags: <defaults>
</compile_context>

<pallas_src>
import functools

import jax
import jax.numpy as jnp
from jax import lax
from jax.experimental import pallas as pl
from jax.experimental.pallas import tpu as pltpu


def _round_up(x, m):
    return ((x + m - 1) // m) * m


def _embed_kernel(labels_ref, drop_ref, table_ref, out_ref, *, num_classes):
    # labels_ref: (TILE_B, 1) int32  — raw class labels for this batch tile
    # drop_ref:   (TILE_B, 1) int32  — 1 where the label is dropped (CFG)
    # table_ref:  (V, H)      float  — full embedding table (VMEM-resident)
    # out_ref:    (TILE_B, H) float  — output embeddings for this batch tile
    labels = labels_ref[...]
    drops = drop_ref[...]
    # Fused token_drop: rewrite dropped labels to the CFG row (num_classes).
    eff = jnp.where(drops != 0, jnp.int32(num_classes), labels)  # (TILE_B, 1)

    tile_b = out_ref.shape[0]
    v = table_ref.shape[0]
    # One-hot gather on the MXU: (TILE_B, V) @ (V, H).
    # Labels outside [0, V) yield an all-zero row (no OOB memory access).
    col_ids = lax.broadcasted_iota(jnp.int32, (tile_b, v), 1)
    onehot = (eff == col_ids).astype(table_ref.dtype)
    out_ref[...] = jnp.dot(
        onehot, table_ref[...], preferred_element_type=jnp.float32
    ).astype(out_ref.dtype)


def label_embed_forward(labels, drop_mask, table, num_classes, *, tile_b=None):
    """out[b, :] = table[where(drop_mask[b], num_classes, labels[b]), :]."""
    B = labels.shape[0]
    V, H = table.shape

    if tile_b is None:
        # f32 output tiles: TILE_B must be a multiple of 8 (sublane-dense).
        # 128 matches MXU geometry on all generations and amortizes the
        # ~600-cycle per-grid-step overhead.
        tile_b = 128 if B >= 128 else _round_up(B, 8)
    b_pad = _round_up(B, tile_b)

    # Padded rows get label 0 / drop 0: they index a valid table row and are
    # sliced off below, so no OOB and no masked partial stores.
    labels_p = jnp.zeros((b_pad, 1), jnp.int32).at[:B, 0].set(
        labels.astype(jnp.int32))
    drop_p = jnp.zeros((b_pad, 1), jnp.int32).at[:B, 0].set(
        drop_mask.astype(jnp.int32))

    grid = (b_pad // tile_b,)
    out = pl.pallas_call(
        functools.partial(_embed_kernel, num_classes=num_classes),
        out_shape=jax.ShapeDtypeStruct((b_pad, H), table.dtype),
        grid_spec=pl.GridSpec(
            grid=grid,
            in_specs=[
                # Per-tile labels / drop mask.
                pl.BlockSpec((tile_b, 1), lambda i: (i, 0)),
                pl.BlockSpec((tile_b, 1), lambda i: (i, 0)),
                # Whole table, constant block index => fetched once, stays
                # resident in VMEM across all batch tiles.
                pl.BlockSpec((V, H), lambda i: (0, 0)),
            ],
            out_specs=pl.BlockSpec((tile_b, H), lambda i: (i, 0)),
        ),
        compiler_params=pltpu.CompilerParams(
            # Independent output tiles: lets v7x split tiles across its 2 TCs.
            dimension_semantics=("parallel",),
            # Headroom for big DiT tables (e.g. 1001x1152 f32 ≈ 4.6 MiB) plus
            # double-buffered label/output tiles.
            vmem_limit_bytes=64 << 20,
        ),
    )(labels_p, drop_p, table)
    return out[:B]


class LabelEmbedder:
    """JAX/Pallas port of the PyTorch LabelEmbedder."""

    def __init__(self, num_classes, hidden_size, dropout_prob, *, param_key):
        use_cfg_embedding = int(dropout_prob > 0)
        # nn.Embedding default init: N(0, 1)
        self.embedding_table = jax.random.normal(
            param_key, (num_classes + use_cfg_embedding, hidden_size),
            dtype=jnp.float32)
        self.num_classes = num_classes
        self.dropout_prob = dropout_prob

    def __call__(self, labels, train, drop_key=None, force_drop_ids=None):
        B = labels.shape[0]
        use_dropout = self.dropout_prob > 0
        if (train and use_dropout) or (force_drop_ids is not None):
            if force_drop_ids is None:
                drop_mask = (jax.random.uniform(drop_key, (B,))
                             < self.dropout_prob).astype(jnp.int32)
            else:
                drop_mask = (force_drop_ids == 1).astype(jnp.int32)
        else:
            drop_mask = jnp.zeros((B,), jnp.int32)
        # Note: if dropout_prob == 0 but force_drop_ids is given, the dropped
        # label (num_classes) has no table row; the in-kernel one-hot then
        # yields a zero embedding instead of an OOB read.
        return label_embed_forward(
            labels, drop_mask, self.embedding_table, self.num_classes)


if __name__ == "__main__":
    num_classes = 10
    hidden_size = 128
    dropout_prob = 0.1
    batch = 8

    root = jax.random.PRNGKey(0)
    k_param, k_labels, k_drop = jax.random.split(root, 3)

    embedder = LabelEmbedder(num_classes, hidden_size, dropout_prob,
                             param_key=k_param)

    labels = jax.random.randint(k_labels, (batch,), 0, num_classes,
                                dtype=jnp.int32)

    # 1) Eval path (no dropout): pure embedding lookup.
    out_eval = embedder(labels, train=False)
    out_eval = jax.block_until_ready(out_eval)
    ref_eval = jnp.take(embedder.embedding_table, labels, axis=0)
    assert out_eval.shape == (batch, hidden_size)
    assert out_eval.dtype == jnp.float32
    assert jnp.allclose(out_eval, ref_eval), "eval-path mismatch"

    # 2) Forced drop path (deterministic CFG drop): half the batch dropped.
    force_drop_ids = (jnp.arange(batch) % 2).astype(jnp.int32)
    out_drop = embedder(labels, train=True, drop_key=k_drop,
                        force_drop_ids=force_drop_ids)
    out_drop = jax.block_until_ready(out_drop)
    dropped_labels = jnp.where(force_drop_ids == 1, num_classes, labels)
    ref_drop = jnp.take(embedder.embedding_table, dropped_labels, axis=0)
    assert jnp.allclose(out_drop, ref_drop), "drop-path mismatch"

    # 3) Random-drop training path: verify it agrees with an equivalent
    #    pure-JAX reference using the same drop mask.
    drop_mask = (jax.random.uniform(k_drop, (batch,)) < dropout_prob)
    out_rand = embedder(labels, train=True, drop_key=k_drop)
    out_rand = jax.block_until_ready(out_rand)
    rand_labels = jnp.where(drop_mask, num_classes, labels)
    ref_rand = jnp.take(embedder.embedding_table, rand_labels, axis=0)
    assert jnp.allclose(out_rand, ref_rand), "random-drop-path mismatch"

    print("KERNEL_OK")
</pallas_src>

<mosaic_0001>
module attributes {stable_mosaic.version = 11 : i64} {
  func.func @_embed_kernel(%arg0: i32, %arg1: memref<8x1xi32, #tpu.memory_space<vmem>>, %arg2: memref<8x1xi32, #tpu.memory_space<vmem>>, %arg3: memref<11x128xf32, #tpu.memory_space<vmem>>, %arg4: memref<8x128xf32, #tpu.memory_space<vmem>>) attributes {dimension_semantics = [#tpu.dimension_semantics<parallel>], iteration_bounds = array<i64: 1>, scalar_prefetch = 0 : i64, scratch_operands = 0 : i64, tpu.core_type = #tpu.core_type<tc>, window_params = [{transform_indices = @transform_0, window_bounds = array<i64: 8, 1>}, {transform_indices = @transform_1, window_bounds = array<i64: 8, 1>}, {pipeline_mode = #tpu.pipeline_mode<synchronous>, transform_indices = @transform_2, window_bounds = array<i64: 11, 128>}, {transform_indices = @transform_3, window_bounds = array<i64: 8, 128>}]} {
    %c0 = arith.constant 0 : index
    %c0_0 = arith.constant 0 : index
    %0 = vector.load %arg1[%c0, %c0_0] : memref<8x1xi32, #tpu.memory_space<vmem>>, vector<8x1xi32>
    %c0_1 = arith.constant 0 : index
    %c0_2 = arith.constant 0 : index
    %1 = vector.load %arg2[%c0_1, %c0_2] : memref<8x1xi32, #tpu.memory_space<vmem>>, vector<8x1xi32>
    %c0_i32 = arith.constant 0 : i32
    %2 = vector.broadcast %c0_i32 : i32 to vector<8x1xi32>
    %3 = arith.cmpi ne, %1, %2 : vector<8x1xi32>
    %c10_i32 = arith.constant 10 : i32
    %4 = vector.broadcast %c10_i32 : i32 to vector<8x1xi32>
    %5 = arith.select %3, %4, %0 : vector<8x1xi1>, vector<8x1xi32>
    %6 = tpu.iota {dimensions = array<i32: 1>} : vector<8x11xi32>
    %7 = vector.broadcast %5 : vector<8x1xi32> to vector<8x11xi32>
    %8 = arith.cmpi eq, %7, %6 : vector<8x11xi32>
    %9 = arith.extui %8 : vector<8x11xi1> to vector<8x11xi32>
    %10 = arith.sitofp %9 : vector<8x11xi32> to vector<8x11xf32>
    %c0_3 = arith.constant 0 : index
    %c0_4 = arith.constant 0 : index
    %11 = vector.load %arg3[%c0_3, %c0_4] : memref<11x128xf32, #tpu.memory_space<vmem>>, vector<11x128xf32>
    %cst = arith.constant dense<0.000000e+00> : vector<8x128xf32>
    %12 = tpu.matmul %10, %11, %cst {dimension_numbers = #tpu.dot_dimension_numbers<[1], [0], [0], [1], [0, 0, 1, 1], [], []>} : vector<8x11xf32>, vector<11x128xf32>, vector<8x128xf32> -> vector<8x128xf32>
    %c0_5 = arith.constant 0 : index
    %c0_6 = arith.constant 0 : index
    %13 = vector.load %arg4[%c0_5, %c0_6] : memref<8x128xf32, #tpu.memory_space<vmem>>, vector<8x128xf32>
    tpu.vector_store %arg4[%c0_5, %c0_6], %12 {strides = array<i32>} : memref<8x128xf32, #tpu.memory_space<vmem>>, vector<8x128xf32>,
    return
  }
  func.func @transform_0(%arg0: i32) -> (i32, i32) {
    %c0_i32 = arith.constant 0 : i32
    %c0_i32_0 = arith.constant 0 : i32
    return %arg0, %c0_i32 : i32, i32
  }
  func.func @transform_1(%arg0: i32) -> (i32, i32) {
    %c0_i32 = arith.constant 0 : i32
    %c0_i32_0 = arith.constant 0 : i32
    return %arg0, %c0_i32 : i32, i32
  }
  func.func @transform_2(%arg0: i32) -> (i32, i32) {
    %c0_i32 = arith.constant 0 : i32
    %c0_i32_0 = arith.constant 0 : i32
    %c0_i32_1 = arith.constant 0 : i32
    return %c0_i32, %c0_i32_0 : i32, i32
  }
  func.func @transform_3(%arg0: i32) -> (i32, i32) {
    %c0_i32 = arith.constant 0 : i32
    %c0_i32_0 = arith.constant 0 : i32
    return %arg0, %c0_i32 : i32, i32
  }
}

</mosaic_0001>

<bundles_post_ra>
// kernel: tpu_custom_call.1
= control target key start
LH: loop header
LB: loop body
LE: loop exit
PB: predicated region body
PF: predicated region fallthrough
CT: control target
= control target key end

     0   :  { %vm33_vm0 = vcmask 1042432   ;;  %v107_v3 = vmov 0   ;;  %s145_s0 = inlined_call_operand.vmem [shape: s32[8,1], index: 0, kind: input, shape index: {}]   ;;  %s146_s1 = inlined_call_operand.vmem [shape: s32[8,1], index: 1, kind: input, shape index: {}]   ;;  %s147_s2 = inlined_call_operand.vmem [shape: f32[11,128], index: 2, kind: input, shape index: {}]   ;;  %s148_s3 = inlined_call_operand.hbm [shape: f32[8,128], index: 3, kind: output, shape index: {}]  }
   0x1   :  { %v15_v0 = vld [vmem:[%s145_s0] sm:$0xff]  ;;  %v28_v2 = vld [vmem:[%s147_s2 + $0x8] sm:$0x7]  ;;  %80 = vset.pattern.permute.xlu0 %v107_v3 }
   0x2   :  { %v16_v1 = vld [vmem:[%s146_s1] sm:$0xff]  ;;  %75 = vmatpush.msk.msra.mxu0 %vm33_vm0, %v28_v2 }
   0x3   :  { %vm17_vm1 = vcmp.ne.s32.totalorder %v16_v1, 0 }
   0x4   :  { %8 = vsyncpa [#allocation3], 0  ;;  %v18_v4 = vsel %vm17_vm1, 10, %v15_v0  ;;  %v27_v5 = vld [vmem:[%s147_s2] sm:$0xff]  ;;  %v19_v6 = vlaneseq  ;;  %vm29_vm2 = vcmask 89088   ;;  %v108_v9 = vmov 0.0  }
   0x5   :  { %22 = vperm.xlu0 %80, %v18_v4   ;;  %52 = vmatpush.msra.mxu0 %v27_v5  ;;  %s109_s0 = smov [#allocation2]   ;;  %s65_s22 = sshll.u32 %s148_s3, 4  ;;  %s66_s22 = int_to_ptr.hbm [resolvable:$true] %s65_s22 }
   0x6   :  { %v20_v7 = vand.u32 127, %v19_v6  ;;  %s63_s1 = sshll.u32 %s109_s0, 4  ;;  %s64_s1 = int_to_ptr.vmem [resolvable:$true] %s63_s1 }
  0x77   :  { %v23_v8 = vpop.permute.xlu0 %22 }
  0x78   :  { %vm24_vm3 = vcmp.eq.s32.totalorder %v23_v8, %v20_v7 }
  0x79   :  { %v74_v10 = vsel %vm24_vm3, 1.0, %v108_v9 }
  0x7a   :  { %76 = vmatmul.msk.f32.vlgmr.msra.gmra.mxu0 %vm29_vm2, %v74_v10 }
  0xf7   :  { %v54_v11 = vpop.f32.mrf.mxu0 }
  0xf8   :  { %57 = vst [vmem:[#allocation2] sm:$0xff] %v54_v11 }
  0xf9   :  { %68 = dma.vmem_to_hbm [thread:$0]  %s64_s1, 128, %s66_s22, [#allocation3]  }
  0xfa   :  { %105 = dma.done.wait [#allocation3], 128  }
  0xfb   :  { %106 = vsyncadd [#allocation3], 4294967168 }
  0xfc   :  { %73 = vsyncpa [#allocation3], 1 }

</bundles_post_ra>
